<compile_context>
chip_gen: v7x
topology: tpu7x:2x2x1
jax: 0.10.0
libtpu: 0.0.40
codegen_flags: <defaults>
</compile_context>

<pallas_src>
import jax
import jax.numpy as jnp
from jax.experimental import pallas as pl
from jax.experimental.pallas import tpu as pltpu  # noqa: F401  (kept for TPU backend symmetry)

K = 32      # in_features
N = 4096    # out_features


def linear_kernel(x_ref, w_ref, o_ref):
    # x_ref: (B, K) bf16, w_ref: (K, N) bf16, o_ref: (B, N) bf16
    acc = jnp.dot(x_ref[...], w_ref[...], preferred_element_type=jnp.float32)
    o_ref[...] = acc.astype(o_ref.dtype)


def _linear_call(x2d, w_t):
    """x2d: (B, K) bf16, w_t: (K, N) bf16 (pre-transposed weight). Returns (B, N) bf16.

    Gridless call: every operand is a single full-array VMEM block (total
    footprint ~256 KiB + B*8 KiB, far under every generation's VMEM), so there
    is nothing to pipeline and no per-step overhead.
    """
    B = x2d.shape[0]
    return pl.pallas_call(
        linear_kernel,
        out_shape=jax.ShapeDtypeStruct((B, N), jnp.bfloat16),
        in_specs=[
            pl.BlockSpec((B, K), lambda: (0, 0)),   # activations: whole (B, 32) slab
            pl.BlockSpec((K, N), lambda: (0, 0)),   # weight: whole (32, 4096) slab
        ],
        out_specs=pl.BlockSpec((B, N), lambda: (0, 0)),
        cost_estimate=pl.CostEstimate(
            flops=2 * B * K * N,
            bytes_accessed=K * N * 2 + B * N * 2 + B * K * 2,
            transcendentals=0,
        ),
    )(x2d, w_t)


@jax.jit
def linear_no_bias(x, w_t):
    """Module-equivalent path. x: (K,) bf16, w_t: (K, N) bf16 -> (N,) bf16 (== F.linear(x, W))."""
    return _linear_call(x.reshape(1, K), w_t).reshape(N)


@jax.jit
def linear_no_bias_batched(xb, w_t):
    """Batched path per perf review. xb: (B, K) bf16 -> (B, N) bf16.

    Amortizes the weight DMA and launch overhead across B rows; use B >= 16
    (bf16 sublane pack), ideally 128-256, when the call site has multiple
    activation vectors.
    """
    return _linear_call(xb, w_t)


if __name__ == "__main__":
    key = jax.random.PRNGKey(0)
    kx, kw, kb = jax.random.split(key, 3)

    # Deterministic parameter init (same shape as nn.Linear(32, 4096).weight: (N, K))
    bound = 1.0 / (K ** 0.5)
    w = jax.random.uniform(kw, (N, K), dtype=jnp.float32,
                           minval=-bound, maxval=bound).astype(jnp.bfloat16)

    # Materialize the transposed (K, N) weight ONCE, outside the hot path.
    w_t = jax.block_until_ready(jnp.asarray(w.T))   # (K, N) bf16
    w_f32_t = w.astype(jnp.float32).T               # for the reference check

    # ---- Module-equivalent single-vector path: x = torch.randn(32, bf16) ----
    x = jax.random.normal(kx, (K,), dtype=jnp.float32).astype(jnp.bfloat16)
    y = jax.block_until_ready(linear_no_bias(x, w_t))

    y_ref = jnp.dot(x.astype(jnp.float32), w_f32_t).astype(jnp.bfloat16)
    assert y.shape == (N,) and y.dtype == jnp.bfloat16
    assert jnp.allclose(y.astype(jnp.float32), y_ref.astype(jnp.float32),
                        atol=1e-2, rtol=1e-2)

    # ---- Batched path (perf-review recommendation), B=16 (bf16 sublane pack) ----
    B = 16
    xb = jax.random.normal(kb, (B, K), dtype=jnp.float32).astype(jnp.bfloat16)
    yb = jax.block_until_ready(linear_no_bias_batched(xb, w_t))

    yb_ref = jnp.dot(xb.astype(jnp.float32), w_f32_t).astype(jnp.bfloat16)
    assert yb.shape == (B, N) and yb.dtype == jnp.bfloat16
    assert jnp.allclose(yb.astype(jnp.float32), yb_ref.astype(jnp.float32),
                        atol=1e-2, rtol=1e-2)

    print("KERNEL_OK")
</pallas_src>

<mosaic_0001>
module attributes {stable_mosaic.version = 11 : i64} {
  func.func @linear_kernel(%arg0: memref<1x32xbf16, #tpu.memory_space<vmem>>, %arg1: memref<32x4096xbf16, #tpu.memory_space<vmem>>, %arg2: memref<1x4096xbf16, #tpu.memory_space<vmem>>) attributes {dimension_semantics = [], scalar_prefetch = 0 : i64, scratch_operands = 0 : i64, tpu.core_type = #tpu.core_type<tc>} {
    %c0 = arith.constant 0 : index
    %c0_0 = arith.constant 0 : index
    %0 = vector.load %arg0[%c0, %c0_0] : memref<1x32xbf16, #tpu.memory_space<vmem>>, vector<1x32xbf16>
    %c0_1 = arith.constant 0 : index
    %c0_2 = arith.constant 0 : index
    %1 = vector.load %arg1[%c0_1, %c0_2] : memref<32x4096xbf16, #tpu.memory_space<vmem>>, vector<32x4096xbf16>
    %cst = arith.constant dense<0.000000e+00> : vector<1x4096xf32>
    %2 = tpu.matmul %0, %1, %cst {dimension_numbers = #tpu.dot_dimension_numbers<[1], [0], [0], [1], [0, 0, 1, 1], [], []>} : vector<1x32xbf16>, vector<32x4096xbf16>, vector<1x4096xf32> -> vector<1x4096xf32>
    %3 = arith.truncf %2 : vector<1x4096xf32> to vector<1x4096xbf16>
    %c0_3 = arith.constant 0 : index
    %c0_4 = arith.constant 0 : index
    %4 = vector.load %arg2[%c0_3, %c0_4] : memref<1x4096xbf16, #tpu.memory_space<vmem>>, vector<1x4096xbf16>
    tpu.vector_store %arg2[%c0_3, %c0_4], %3 {strides = array<i32>} : memref<1x4096xbf16, #tpu.memory_space<vmem>>, vector<1x4096xbf16>,
    return
  }
}

</mosaic_0001>

<bundles_post_ra>
// kernel: linear_no_bias.1
= control target key start
LH: loop header
LB: loop body
LE: loop exit
PB: predicated region body
PF: predicated region fallthrough
CT: control target
= control target key end

     0   :  { %7 = vsyncpa [#allocation3], 0  ;;  %s1508_s9 = smov [#allocation2]   ;;  %s1679_s0 = inlined_call_operand.vmem [shape: bf16[1,32], index: 0, kind: input, shape index: {}]   ;;  %s1680_s1 = inlined_call_operand.hbm [shape: bf16[32,4096], index: 1, kind: input, shape index: {}]   ;;  %s1681_s2 = inlined_call_operand.vmem [shape: bf16[1,4096], index: 2, kind: output, shape index: {}]  }
   0x1   :  { %s15_s10 = sshll.u32 %s1508_s9, 4  ;;  %s1484_s13 = scalar_lea.hbm %s1680_s1, 8192  ;;  %s16_s10 = int_to_ptr.vmem [resolvable:$true] %s15_s10 }
   0x2   :  { %p1485_p0 = scmp.ne.s32.totalorder %s1680_s1, %s1484_s13  ;;  %p1488_p1 = scmp.lt.u32.totalorder %s1484_s13, %s1680_s1 }
   0x4   :  { %p1490_p2 = pnand %p1488_p1, %p1485_p0 }
   0x6   :  { %1493 = shalt.err (!%p1490_p2)
}
   0x7   :  { %s1494_s18 = scalar_lea.vmem %s16_s10, 8192  ;;  %p1499_p4 = scmp.lt.s32.totalorder %s16_s10, %s16_s10 }
   0x8   :  { %p1495_p3 = scmp.ne.s32.totalorder %s16_s10, %s1494_s18  ;;  %p1500_p5 = scmp.lt.s32.totalorder %s1494_s18, %s1494_s18 }
   0xa   :  { %p1501_p6 = por %p1500_p5, %p1499_p4 }
   0xc   :  { %p1502_p7 = pnand %p1501_p6, %p1495_p3 }
   0xe   :  { %1505 = shalt.err (!%p1502_p7)
}
   0xf   :  { %s1509_s19 = smov 2048   ;;  %s1510_s20 = smov 128  }
  0x10   :  { %21 = dma.hbm_to_vmem [thread:$0]  %s1680_s1, 8192, %s16_s10, [#allocation3], %s1509_s19, %s1509_s19, %s1510_s20  }
  0x11   :  { %1506 = dma.done.wait [#allocation3], 8192  }
  0x12   :  { %1507 = vsyncadd [#allocation3], 4294959104  ;;  %v1511_v0 = vmov 0   ;;  %v27_v1 = vld [vmem:[#allocation2] sm:$0xff]  ;;  %v28_v3 = vld [vmem:[#allocation2 + $0x8] sm:$0xff]  ;;  %vm411_vm0 = vcmask 261120  }
  0x13   :  { %447 = vmatprep.mubr.bf16.mxu0 %v1511_v0  ;;  %488 = vmatprep.mubr.bf16.mxu1 %v1511_v0  ;;  %v43_v2 = vld [vmem:[#allocation2 + $0x80] sm:$0xff]  ;;  %v44_v5 = vld [vmem:[#allocation2 + $0x88] sm:$0xff]  ;;  %v29_v15 = vld [vmem:[#allocation2 + $0x10] sm:$0xff]  ;;  %vm1335_vm1 = vcmask 1040384   ;;  %vm1336_vm2 = vsmask.f32 256 }
  0x14   :  { %v1384_v4 = vcombine.high %v27_v1, %v43_v2  ;;  %v1383_v6 = vcombine.low %v27_v1, %v43_v2  ;;  %v59_v7 = vld [vmem:[#allocation2 + $0x100] sm:$0xff]  ;;  %v1386_v9 = vcombine.high %v28_v3, %v44_v5  ;;  %v1385_v10 = vcombine.low %v28_v3, %v44_v5  ;;  %v60_v12 = vld [vmem:[#allocation2 + $0x108] sm:$0xff]  ;;  %v45_v16 = vld [vmem:[#allocation2 + $0x90] sm:$0xff] }
  0x15   :  { %v75_v8 = vld [vmem:[#allocation2 + $0x180] sm:$0xff]  ;;  %v76_v13 = vld [vmem:[#allocation2 + $0x188] sm:$0xff]  ;;  %v30_v17 = vld [vmem:[#allocation2 + $0x18] sm:$0xff]  ;;  %v1388_v21 = vcombine.high %v29_v15, %v45_v16  ;;  %v1387_v28 = vcombine.low %v29_v15, %v45_v16  ;;  %vm1338_vm3 = vcmask 1041409   ;;  %vm1339_vm4 = vsmask.f32 1280 }
  0x16   :  { %v1416_v11 = vcombine.high %v59_v7, %v75_v8  ;;  %415 = vmatprep.subr.bf16.mxu0 %v1384_v4  ;;  %v1418_v14 = vcombine.high %v60_v12, %v76_v13  ;;  %456 = vmatprep.subr.bf16.mxu1 %v1386_v9  ;;  %v1415_v18 = vcombine.low %v59_v7, %v75_v8  ;;  %v46_v19 = vld [vmem:[#allocation2 + $0x98] sm:$0xff]  ;;  %v61_v23 = vld [vmem:[#allocation2 + $0x110] sm:$0xff]  ;;  %v1545_v27 = vld [vmem:[%s1679_s0] sm:$0x1]  ;;  %vm1342_vm7 = vcmask 1042434  }
  0x17   :  { %416 = vmatpush1.bf16.msra.mxu0 %v1383_v6  ;;  %457 = vmatpush1.bf16.msra.mxu1 %v1385_v10  ;;  %v1417_v20 = vcombine.low %v60_v12, %v76_v13  ;;  %v1390_v22 = vcombine.high %v30_v17, %v46_v19  ;;  %v77_v24 = vld [vmem:[#allocation2 + $0x190] sm:$0xff]  ;;  %v62_v25 = vld [vmem:[#allocation2 + $0x118] sm:$0xff]  ;;  %v1389_v29 = vcombine.low %v30_v17, %v46_v19  ;;  %v31_v32 = vld [vmem:[#allocation2 + $0x20] sm:$0xff]  ;;  %vm1343_vm8 = vsmask.f32 2304 }
  0x18   :  { %417 = vmatprep.subr.bf16.mxu0 %v1416_v11  ;;  %458 = vmatprep.subr.bf16.mxu1 %v1418_v14  ;;  %v78_v26 = vld [vmem:[#allocation2 + $0x198] sm:$0xff]  ;;  %v1420_v30 = vcombine.high %v61_v23, %v77_v24  ;;  %v47_v33 = vld [vmem:[#allocation2 + $0xa0] sm:$0xff]  ;;  %v32_v34 = vld [vmem:[#allocation2 + $0x28] sm:$0xff]  ;;  %v1419_v36 = vcombine.low %v61_v23, %v77_v24  ;;  %vm1346_vm11 = vcmask 1043459   ;;  %vm1347_vm12 = vsmask.f32 3328 }
  0x19   :  { %v1422_v31 = vcombine.high %v62_v25, %v78_v26  ;;  %v48_v35 = vld [vmem:[#allocation2 + $0xa8] sm:$0xff]  ;;  %v1421_v37 = vcombine.low %v62_v25, %v78_v26  ;;  %v1392_v38 = vcombine.high %v31_v32, %v47_v33  ;;  %v63_v40 = vld [vmem:[#allocation2 + $0x120] sm:$0xff]  ;;  %v1391_v44 = vcombine.low %v31_v32, %v47_v33  ;;  %v33_v48 = vld [vmem:[#allocation2 + $0x30] sm:$0xff] }
  0x1a   :  { %v1394_v39 = vcombine.high %v32_v34, %v48_v35  ;;  %v79_v41 = vld [vmem:[#allocation2 + $0x1a0] sm:$0xff]  ;;  %v64_v42 = vld [vmem:[#allocation2 + $0x128] sm:$0xff]  ;;  %v1393_v45 = vcombine.low %v32_v34, %v48_v35  ;;  %v49_v49 = vld [vmem:[#allocation2 + $0xb0] sm:$0xff]  ;;  %vm1350_vm15 = vcmask 1044484  }
  0x1b   :  { %418 = vmatpush1.bf16.msra.mxu0 %v1415_v18  ;;  %459 = vmatpush1.bf16.msra.mxu1 %v1417_v20  ;;  %v80_v43 = vld [vmem:[#allocation2 + $0x1a8] sm:$0xff]  ;;  %v1424_v46 = vcombine.high %v63_v40, %v79_v41  ;;  %v34_v50 = vld [vmem:[#allocation2 + $0x38] sm:$0xff]  ;;  %v1423_v52 = vcombine.low %v63_v40, %v79_v41  ;;  %v1396_v54 = vcombine.high %v33_v48, %v49_v49  ;;  %v65_v56 = vld [vmem:[#allocation2 + $0x130] sm:$0xff] }
  0x1c   :  { %497 = vmatprep.subr.bf16.mxu0 %v1388_v21  ;;  %538 = vmatprep.subr.bf16.mxu1 %v1390_v22  ;;  %v1426_v47 = vcombine.high %v64_v42, %v80_v43  ;;  %v50_v51 = vld [vmem:[#allocation2 + $0xb8] sm:$0xff]  ;;  %v1425_v53 = vcombine.low %v64_v42, %v80_v43  ;;  %v81_v57 = vld [vmem:[#allocation2 + $0x1b0] sm:$0xff]  ;;  %v1395_v60 = vcombine.low %v33_v48, %v49_v49  ;;  %v35_v1 = vld [vmem:[#allocation2 + $0x40] sm:$0xff] }
  0x1d   :  { %v1398_v55 = vcombine.high %v34_v50, %v50_v51  ;;  %v66_v58 = vld [vmem:[#allocation2 + $0x138] sm:$0xff]  ;;  %v1397_v61 = vcombine.low %v34_v50, %v50_v51  ;;  %v1428_v62 = vcombine.high %v65_v56, %v81_v57  ;;  %v51_v2 = vld [vmem:[#allocation2 + $0xc0] sm:$0xff]  ;;  %v36_v3 = vld [vmem:[#allocation2 + $0x48] sm:$0xff]  ;;  %v1427_v5 = vcombine.low %v65_v56, %v81_v57 }
  0x1e   :  { %1447 = vmatmul.mubr.msk.bf16.vlgmr.msra.gmra.mrb[0].mxu0 %vm411_vm0, %v1545_v27  ;;  %1448 = vmatmul.mubr.msk.bf16.vlgmr.msra.gmra.mrb[0].mxu1 %vm411_vm0, %v1545_v27  ;;  %v82_v59 = vld [vmem:[#allocation2 + $0x1b8] sm:$0xff]  ;;  %v52_v4 = vld [vmem:[#allocation2 + $0xc8] sm:$0xff]  ;;  %v1400_v7 = vcombine.high %v35_v1, %v51_v2  ;;  %v67_v9 = vld [vmem:[#allocation2 + $0x140] sm:$0xff]  ;;  %v1399_v13 = vcombine.low %v35_v1, %v51_v2 }
  0x1f   :  { %498 = vmatpush1.bf16.msra.mxu0 %v1387_v28  ;;  %539 = vmatpush1.bf16.msra.mxu1 %v1389_v29  ;;  %v1430_v63 = vcombine.high %v66_v58, %v82_v59  ;;  %v1429_v6 = vcombine.low %v66_v58, %v82_v59  ;;  %v1402_v8 = vcombine.high %v36_v3, %v52_v4  ;;  %v83_v10 = vld [vmem:[#allocation2 + $0x1c0] sm:$0xff]  ;;  %v68_v11 = vld [vmem:[#allocation2 + $0x148] sm:$0xff]  ;;  %v37_v17 = vld [vmem:[#allocation2 + $0x50] sm:$0xff] }
  0x20   :  { %499 = vmatprep.subr.bf16.mxu0 %v1420_v30  ;;  %540 = vmatprep.subr.bf16.mxu1 %v1422_v31  ;;  %v84_v12 = vld [vmem:[#allocation2 + $0x1c8] sm:$0xff]  ;;  %v1401_v14 = vcombine.low %v36_v3, %v52_v4  ;;  %v1432_v15 = vcombine.high %v67_v9, %v83_v10  ;;  %v53_v18 = vld [vmem:[#allocation2 + $0xd0] sm:$0xff]  ;;  %v38_v19 = vld [vmem:[#allocation2 + $0x58] sm:$0xff]  ;;  %v1431_v21 = vcombine.low %v67_v9, %v83_v10 }
  0x21   :  { %529 = vmatprep.mubr.bf16.mxu0 %v1511_v0  ;;  %570 = vmatprep.mubr.bf16.mxu1 %v1511_v0  ;;  %v1434_v16 = vcombine.high %v68_v11, %v84_v12  ;;  %v54_v20 = vld [vmem:[#allocation2 + $0xd8] sm:$0xff]  ;;  %v1433_v22 = vcombine.low %v68_v11, %v84_v12  ;;  %v1404_v23 = vcombine.high %v37_v17, %v53_v18  ;;  %v69_v25 = vld [vmem:[#allocation2 + $0x150] sm:$0xff]  ;;  %v39_v34 = vld [vmem:[#allocation2 + $0x60] sm:$0xff] }
  0x22   :  { %v1406_v24 = vcombine.high %v38_v19, %v54_v20  ;;  %v85_v26 = vld [vmem:[#allocation2 + $0x1d0] sm:$0xff]  ;;  %v70_v28 = vld [vmem:[#allocation2 + $0x158] sm:$0xff]  ;;  %v1403_v30 = vcombine.low %v37_v17, %v53_v18  ;;  %v1405_v31 = vcombine.low %v38_v19, %v54_v20  ;;  %v55_v35 = vld [vmem:[#allocation2 + $0xe0] sm:$0xff] }
  0x23   :  { %500 = vmatpush1.bf16.msra.mxu0 %v1419_v36  ;;  %541 = vmatpush1.bf16.msra.mxu1 %v1421_v37  ;;  %v86_v29 = vld [vmem:[#allocation2 + $0x1d8] sm:$0xff]  ;;  %v1436_v32 = vcombine.high %v69_v25, %v85_v26  ;;  %v40_v36 = vld [vmem:[#allocation2 + $0x68] sm:$0xff]  ;;  %v1408_v40 = vcombine.high %v39_v34, %v55_v35  ;;  %v71_v42 = vld [vmem:[#allocation2 + $0x160] sm:$0xff] }
  0x24   :  { %579 = vmatprep.subr.bf16.mxu0 %v1392_v38  ;;  %620 = vmatprep.subr.bf16.mxu1 %v1394_v39  ;;  %v1438_v33 = vcombine.high %v70_v28, %v86_v29  ;;  %v56_v37 = vld [vmem:[#allocation2 + $0xe8] sm:$0xff]  ;;  %v1435_v38 = vcombine.low %v69_v25, %v85_v26  ;;  %v1437_v39 = vcombine.low %v70_v28, %v86_v29  ;;  %v87_v43 = vld [vmem:[#allocation2 + $0x1e0] sm:$0xff]  ;;  %v41_v50 = vld [vmem:[#allocation2 + $0x70] sm:$0xff] }
  0x25   :  { %v1410_v41 = vcombine.high %v40_v36, %v56_v37  ;;  %v1440_v48 = vcombine.high %v71_v42, %v87_v43  ;;  %v57_v51 = vld [vmem:[#allocation2 + $0xf0] sm:$0xff]  ;;  %vm1337_vm5 = vmand %vm1335_vm1, %vm1336_vm2 }
  0x26   :  { %1449 = vmatmul.mubr.msk.bf16.vlgmr.msra.gmra.mrb[4].mxu0 %vm411_vm0, %v1545_v27  ;;  %1450 = vmatmul.mubr.msk.bf16.vlgmr.msra.gmra.mrb[4].mxu1 %vm411_vm0, %v1545_v27  ;;  %v1412_v56 = vcombine.high %v41_v50, %v57_v51  ;;  %v73_v58 = vld [vmem:[#allocation2 + $0x170] sm:$0xff]  ;;  %vm1340_vm6 = vmand %vm1338_vm3, %vm1339_vm4  ;;  %vm1354_vm3 = vcmask 1045509   ;;  %vm1355_vm4 = vsmask.f32 5376 }
  0x27   :  { %580 = vmatpush1.bf16.msra.mxu0 %v1391_v44  ;;  %621 = vmatpush1.bf16.msra.mxu1 %v1393_v45  ;;  %v72_v44 = vld [vmem:[#allocation2 + $0x168] sm:$0xff]  ;;  %v89_v59 = vld [vmem:[#allocation2 + $0x1f0] sm:$0xff]  ;;  %vm1341_vm9 = vmor %vm1340_vm6, %vm1337_vm5 }
  0x28   :  { %581 = vmatprep.subr.bf16.mxu0 %v1424_v46  ;;  %622 = vmatprep.subr.bf16.mxu1 %v1426_v47  ;;  %v88_v45 = vld [vmem:[#allocation2 + $0x1e8] sm:$0xff]  ;;  %v1407_v46 = vcombine.low %v39_v34, %v55_v35  ;;  %v1409_v47 = vcombine.low %v40_v36, %v56_v37  ;;  %v1444_v1 = vcombine.high %v73_v58, %v89_v59  ;;  %vm1344_vm10 = vmand %vm1342_vm7, %vm1343_vm8  ;;  %vm1358_vm7 = vcmask 1046534  }
  0x29   :  { %611 = vmatprep.mubr.bf16.mxu0 %v1511_v0  ;;  %652 = vmatprep.mubr.bf16.mxu1 %v1511_v0  ;;  %v1442_v49 = vcombine.high %v72_v44, %v88_v45  ;;  %v1443_v3 = vcombine.low %v73_v58, %v89_v59  ;;  %vm1593_vm13 = vmor %vm1344_vm10, %vm1341_vm9  ;;  %vm1359_vm8 = vsmask.f32 6400 }
  0x2a   :  { %vm1597_vm14 = vmand %vm1346_vm11, %vm1347_vm12  ;;  %vm1362_vm11 = vcmask 1047559   ;;  %vm1363_vm12 = vsmask.f32 7424 }
  0x2b   :  { %582 = vmatpush1.bf16.msra.mxu0 %v1423_v52  ;;  %623 = vmatpush1.bf16.msra.mxu1 %v1425_v53  ;;  %v42_v52 = vld [vmem:[#allocation2 + $0x78] sm:$0xff]  ;;  %vm1349_vm1 = vmor %vm1597_vm14, %vm1593_vm13 }
  0x2c   :  { %661 = vmatprep.subr.bf16.mxu0 %v1396_v54  ;;  %702 = vmatprep.subr.bf16.mxu1 %v1398_v55  ;;  %v58_v53 = vld [vmem:[#allocation2 + $0xf8] sm:$0xff]  ;;  %v1439_v54 = vcombine.low %v71_v42, %v87_v43  ;;  %v1441_v55 = vcombine.low %v72_v44, %v88_v45  ;;  %vm1613_vm6 = vmand %vm1354_vm3, %vm1355_vm4 }
  0x2d   :  { %v1414_v57 = vcombine.high %v42_v52, %v58_v53  ;;  %vm1360_vm10 = vmand %vm1358_vm7, %vm1359_vm8 }
  0x2e   :  { %1451 = vmatmul.mubr.msk.bf16.vlgmr.msra.gmra.mrb[8].mxu0 %vm411_vm0, %v1545_v27  ;;  %1452 = vmatmul.mubr.msk.bf16.vlgmr.msra.gmra.mrb[8].mxu1 %vm411_vm0, %v1545_v27  ;;  %vm1364_vm14 = vmand %vm1362_vm11, %vm1363_vm12 }
  0x2f   :  { %662 = vmatpush1.bf16.msra.mxu0 %v1395_v60  ;;  %703 = vmatpush1.bf16.msra.mxu1 %v1397_v61  ;;  %v74_v60 = vld [vmem:[#allocation2 + $0x178] sm:$0xff] }
  0x30   :  { %663 = vmatprep.subr.bf16.mxu0 %v1428_v62  ;;  %704 = vmatprep.subr.bf16.mxu1 %v1430_v63  ;;  %v90_v61 = vld [vmem:[#allocation2 + $0x1f8] sm:$0xff]  ;;  %v1411_v62 = vcombine.low %v41_v50, %v57_v51  ;;  %v1413_v63 = vcombine.low %v42_v52, %v58_v53 }
  0x31   :  { %693 = vmatprep.mubr.bf16.mxu0 %v1511_v0  ;;  %734 = vmatprep.mubr.bf16.mxu1 %v1511_v0  ;;  %v1446_v2 = vcombine.high %v74_v60, %v90_v61  ;;  %v1445_v4 = vcombine.low %v74_v60, %v90_v61 }
  0x33   :  { %664 = vmatpush1.bf16.msra.mxu0 %v1427_v5  ;;  %705 = vmatpush1.bf16.msra.mxu1 %v1429_v6  ;;  %v1512_v5 = vmov 1966171168  }
  0x34   :  { %743 = vmatprep.subr.bf16.mxu0 %v1400_v7  ;;  %784 = vmatprep.subr.bf16.mxu1 %v1402_v8  ;;  %v1140_v6 = vunpack.c.l.s4 %v1512_v5  ;;  %v1142_v7 = vlaneseq }
  0x36   :  { %1453 = vmatmul.mubr.msk.bf16.vlgmr.msra.gmra.mrb[12].mxu0 %vm411_vm0, %v1545_v27  ;;  %1454 = vmatmul.mubr.msk.bf16.vlgmr.msra.gmra.mrb[12].mxu1 %vm411_vm0, %v1545_v27  ;;  %v1143_v8 = vshrl.u32 %v1142_v7, 7 }
  0x37   :  { %744 = vmatpush1.bf16.msra.mxu0 %v1399_v13  ;;  %785 = vmatpush1.bf16.msra.mxu1 %v1401_v14 }
  0x38   :  { %745 = vmatprep.subr.bf16.mxu0 %v1432_v15  ;;  %786 = vmatprep.subr.bf16.mxu1 %v1434_v16 }
  0x39   :  { %775 = vmatprep.mubr.bf16.mxu0 %v1511_v0  ;;  %816 = vmatprep.mubr.bf16.mxu1 %v1511_v0 }
  0x3b   :  { %746 = vmatpush1.bf16.msra.mxu0 %v1431_v21  ;;  %787 = vmatpush1.bf16.msra.mxu1 %v1433_v22 }
  0x3c   :  { %825 = vmatprep.subr.bf16.mxu0 %v1404_v23  ;;  %866 = vmatprep.subr.bf16.mxu1 %v1406_v24 }
  0x3e   :  { %1455 = vmatmul.mubr.msk.bf16.vlgmr.msra.gmra.mrb[16].mxu0 %vm411_vm0, %v1545_v27  ;;  %1456 = vmatmul.mubr.msk.bf16.vlgmr.msra.gmra.mrb[16].mxu1 %vm411_vm0, %v1545_v27 }
  0x3f   :  { %826 = vmatpush1.bf16.msra.mxu0 %v1403_v30  ;;  %867 = vmatpush1.bf16.msra.mxu1 %v1405_v31 }
  0x40   :  { %827 = vmatprep.subr.bf16.mxu0 %v1436_v32  ;;  %868 = vmatprep.subr.bf16.mxu1 %v1438_v33 }
  0x41   :  { %857 = vmatprep.mubr.bf16.mxu0 %v1511_v0  ;;  %898 = vmatprep.mubr.bf16.mxu1 %v1511_v0 }
  0x43   :  { %828 = vmatpush1.bf16.msra.mxu0 %v1435_v38  ;;  %869 = vmatpush1.bf16.msra.mxu1 %v1437_v39 }
  0x44   :  { %907 = vmatprep.subr.bf16.mxu0 %v1408_v40  ;;  %948 = vmatprep.subr.bf16.mxu1 %v1410_v41 }
  0x46   :  { %1457 = vmatmul.mubr.msk.bf16.vlgmr.msra.gmra.mrb[20].mxu0 %vm411_vm0, %v1545_v27  ;;  %1458 = vmatmul.mubr.msk.bf16.vlgmr.msra.gmra.mrb[20].mxu1 %vm411_vm0, %v1545_v27 }
  0x47   :  { %908 = vmatpush1.bf16.msra.mxu0 %v1407_v46  ;;  %949 = vmatpush1.bf16.msra.mxu1 %v1409_v47  ;;  %v1366_v46 = vld [vmem:[%s1681_s2] sm:$0xff] }
  0x48   :  { %909 = vmatprep.subr.bf16.mxu0 %v1440_v48  ;;  %950 = vmatprep.subr.bf16.mxu1 %v1442_v49 }
  0x49   :  { %939 = vmatprep.mubr.bf16.mxu0 %v1511_v0  ;;  %980 = vmatprep.mubr.bf16.mxu1 %v1511_v0 }
  0x4b   :  { %910 = vmatpush1.bf16.msra.mxu0 %v1439_v54  ;;  %951 = vmatpush1.bf16.msra.mxu1 %v1441_v55 }
  0x4c   :  { %989 = vmatprep.subr.bf16.mxu0 %v1412_v56  ;;  %1030 = vmatprep.subr.bf16.mxu1 %v1414_v57 }
  0x4e   :  { %1459 = vmatmul.mubr.msk.bf16.vlgmr.msra.gmra.mrb[24].mxu0 %vm411_vm0, %v1545_v27  ;;  %1460 = vmatmul.mubr.msk.bf16.vlgmr.msra.gmra.mrb[24].mxu1 %vm411_vm0, %v1545_v27 }
  0x4f   :  { %990 = vmatpush1.bf16.msra.mxu0 %v1411_v62  ;;  %1031 = vmatpush1.bf16.msra.mxu1 %v1413_v63 }
  0x50   :  { %991 = vmatprep.subr.bf16.mxu0 %v1444_v1  ;;  %1032 = vmatprep.subr.bf16.mxu1 %v1446_v2 }
  0x51   :  { %1021 = vmatprep.mubr.bf16.mxu0 %v1511_v0  ;;  %1062 = vmatprep.mubr.bf16.mxu1 %v1511_v0  ;;  %v1141_v0 = vunpack.c.0.s8 %v1140_v6 }
  0x53   :  { %992 = vmatpush1.bf16.msra.mxu0 %v1443_v3  ;;  %1033 = vmatpush1.bf16.msra.mxu1 %v1445_v4  ;;  %v1601_v11 = vsub.s32 %v1141_v0, %v1143_v8 }
  0x56   :  { %1461 = vmatmul.mubr.msk.bf16.vlgmr.msra.gmra.mrb[28].mxu0 %vm411_vm0, %v1545_v27  ;;  %1462 = vmatmul.mubr.msk.bf16.vlgmr.msra.gmra.mrb[28].mxu1 %vm411_vm0, %v1545_v27  ;;  %vm1351_vm0 = vsmask.f32 4352 }
  0x57   :  { %vm1352_vm2 = vmand %vm1350_vm15, %vm1351_vm0 }
  0x58   :  { %vm1609_vm5 = vmor %vm1352_vm2, %vm1349_vm1 }
  0x59   :  { %vm1357_vm9 = vmor %vm1613_vm6, %vm1609_vm5 }
  0x5a   :  { %vm1361_vm13 = vmor %vm1360_vm10, %vm1357_vm9 }
  0x5b   :  { %vm1625_vm15 = vmor %vm1364_vm14, %vm1361_vm13 }
  0xf1   :  { %v449_v10 = vpop.f32.mrb[0].mxu0  ;;  %v490_v12 = vpop.f32.mrb[0].mxu1 }
  0xf2   :  { %v451_v13 = vpop.f32.mrb[1].mxu0  ;;  %v492_v15 = vpop.f32.mrb[1].mxu1 }
  0xf3   :  { %v1463_v14 = vpack.c.bf16 %v451_v13, %v449_v10  ;;  %v453_v16 = vpop.f32.mrb[2].mxu0  ;;  %v1464_v17 = vpack.c.bf16 %v492_v15, %v490_v12  ;;  %v494_v18 = vpop.f32.mrb[2].mxu1  ;;  %v1369_v13 = vld [vmem:[%s1681_s2 + $0x8] sm:$0xff] }
  0xf4   :  { %v454_v19 = vpop.f32.mrb[3].mxu0  ;;  %v495_v21 = vpop.f32.mrb[3].mxu1 }
  0xf5   :  { %v1145_v20 = vrot.slane %v1463_v14, %v1601_v11  ;;  %v1152_v22 = vrot.slane %v1464_v17, %v1601_v11 }
  0xf7   :  { %v1167_v24 = vcombine.low %v1145_v20, %v1152_v22 }
  0xf9   :  { %v531_v26 = vpop.f32.mrb[4].mxu0  ;;  %v572_v28 = vpop.f32.mrb[4].mxu1  ;;  %v1175_v41 = vrot.slane %v1167_v24, %v1601_v11 }
  0xfa   :  { %v533_v29 = vpop.f32.mrb[5].mxu0  ;;  %v574_v31 = vpop.f32.mrb[5].mxu1 }
  0xfb   :  { %v1465_v30 = vpack.c.bf16 %v533_v29, %v531_v26  ;;  %v535_v32 = vpop.f32.mrb[6].mxu0  ;;  %v1466_v33 = vpack.c.bf16 %v574_v31, %v572_v28  ;;  %v576_v34 = vpop.f32.mrb[6].mxu1 }
  0xfc   :  { %v536_v35 = vpop.f32.mrb[7].mxu0  ;;  %v577_v37 = vpop.f32.mrb[7].mxu1 }
  0xfd   :  { %v1159_v36 = vrot.slane %v1465_v30, %v1601_v11  ;;  %v1166_v38 = vrot.slane %v1466_v33, %v1601_v11 }
  0xff   :  { %v1168_v39 = vcombine.low %v1159_v36, %v1166_v38 }
 0x101   :  { %v613_v40 = vpop.f32.mrb[8].mxu0  ;;  %v1182_v42 = vrot.slane %v1168_v39, %v1601_v11  ;;  %v654_v43 = vpop.f32.mrb[8].mxu1 }
 0x102   :  { %v615_v44 = vpop.f32.mrb[9].mxu0  ;;  %v656_v48 = vpop.f32.mrb[9].mxu1 }
 0x103   :  { %v1467_v47 = vpack.c.bf16 %v615_v44, %v613_v40  ;;  %v617_v49 = vpop.f32.mrb[10].mxu0  ;;  %v1183_v50 = vcombine.low %v1175_v41, %v1182_v42  ;;  %v1468_v51 = vpack.c.bf16 %v656_v48, %v654_v43  ;;  %v658_v52 = vpop.f32.mrb[10].mxu1 }
 0x104   :  { %v618_v53 = vpop.f32.mrb[11].mxu0  ;;  %v659_v55 = vpop.f32.mrb[11].mxu1 }
 0x105   :  { %v1194_v54 = vrot.slane %v1467_v47, %v1601_v11  ;;  %v1367_v56 = vsel %vm1625_vm15, %v1183_v50, %v1366_v46  ;;  %v1201_v57 = vrot.slane %v1468_v51, %v1601_v11  ;;  %v1372_v46 = vld [vmem:[%s1681_s2 + $0x10] sm:$0xff] }
 0x106   :  { %1368 = vst [vmem:[%s1681_s2] sm:$0xff] %v1367_v56 }
 0x107   :  { %v1216_v58 = vcombine.low %v1194_v54, %v1201_v57 }
 0x109   :  { %v695_v59 = vpop.f32.mrb[12].mxu0  ;;  %v736_v60 = vpop.f32.mrb[12].mxu1  ;;  %v1224_v9 = vrot.slane %v1216_v58, %v1601_v11 }
 0x10a   :  { %v697_v61 = vpop.f32.mrb[13].mxu0  ;;  %v738_v63 = vpop.f32.mrb[13].mxu1 }
 0x10b   :  { %v1469_v62 = vpack.c.bf16 %v697_v61, %v695_v59  ;;  %v699_v1 = vpop.f32.mrb[14].mxu0  ;;  %v1470_v2 = vpack.c.bf16 %v738_v63, %v736_v60  ;;  %v740_v3 = vpop.f32.mrb[14].mxu1 }
 0x10c   :  { %v700_v4 = vpop.f32.mrb[15].mxu0  ;;  %v741_v6 = vpop.f32.mrb[15].mxu1 }
 0x10d   :  { %v1208_v5 = vrot.slane %v1469_v62, %v1601_v11  ;;  %v1215_v7 = vrot.slane %v1470_v2, %v1601_v11 }
 0x10f   :  { %v1217_v0 = vcombine.low %v1208_v5, %v1215_v7 }
 0x111   :  { %v777_v8 = vpop.f32.mrb[16].mxu0  ;;  %v1231_v27 = vrot.slane %v1217_v0, %v1601_v11  ;;  %v818_v10 = vpop.f32.mrb[16].mxu1 }
 0x112   :  { %v779_v12 = vpop.f32.mrb[17].mxu0  ;;  %v820_v15 = vpop.f32.mrb[17].mxu1 }
 0x113   :  { %v1471_v14 = vpack.c.bf16 %v779_v12, %v777_v8  ;;  %v781_v16 = vpop.f32.mrb[18].mxu0  ;;  %v1232_v17 = vcombine.low %v1224_v9, %v1231_v27  ;;  %v1472_v18 = vpack.c.bf16 %v820_v15, %v818_v10  ;;  %v822_v19 = vpop.f32.mrb[18].mxu1  ;;  %v1375_v27 = vld [vmem:[%s1681_s2 + $0x18] sm:$0xff] }
 0x114   :  { %v782_v20 = vpop.f32.mrb[19].mxu0  ;;  %v823_v22 = vpop.f32.mrb[19].mxu1 }
 0x115   :  { %v1243_v21 = vrot.slane %v1471_v14, %v1601_v11  ;;  %v1370_v23 = vsel %vm1625_vm15, %v1232_v17, %v1369_v13  ;;  %v1250_v24 = vrot.slane %v1472_v18, %v1601_v11 }
 0x116   :  { %1371 = vst [vmem:[%s1681_s2 + $0x8] sm:$0xff] %v1370_v23 }
 0x117   :  { %v1265_v25 = vcombine.low %v1243_v21, %v1250_v24 }
 0x119   :  { %v859_v26 = vpop.f32.mrb[20].mxu0  ;;  %v900_v28 = vpop.f32.mrb[20].mxu1  ;;  %v1273_v41 = vrot.slane %v1265_v25, %v1601_v11 }
 0x11a   :  { %v861_v29 = vpop.f32.mrb[21].mxu0  ;;  %v902_v31 = vpop.f32.mrb[21].mxu1 }
 0x11b   :  { %v1473_v30 = vpack.c.bf16 %v861_v29, %v859_v26  ;;  %v863_v32 = vpop.f32.mrb[22].mxu0  ;;  %v1474_v33 = vpack.c.bf16 %v902_v31, %v900_v28  ;;  %v904_v34 = vpop.f32.mrb[22].mxu1 }
 0x11c   :  { %v864_v35 = vpop.f32.mrb[23].mxu0  ;;  %v905_v37 = vpop.f32.mrb[23].mxu1 }
 0x11d   :  { %v1257_v36 = vrot.slane %v1473_v30, %v1601_v11  ;;  %v1264_v38 = vrot.slane %v1474_v33, %v1601_v11 }
 0x11f   :  { %v1266_v39 = vcombine.low %v1257_v36, %v1264_v38 }
 0x121   :  { %v941_v40 = vpop.f32.mrb[24].mxu0  ;;  %v1280_v42 = vrot.slane %v1266_v39, %v1601_v11  ;;  %v982_v43 = vpop.f32.mrb[24].mxu1 }
 0x122   :  { %v943_v44 = vpop.f32.mrb[25].mxu0  ;;  %v984_v48 = vpop.f32.mrb[25].mxu1 }
 0x123   :  { %v1475_v47 = vpack.c.bf16 %v943_v44, %v941_v40  ;;  %v945_v49 = vpop.f32.mrb[26].mxu0  ;;  %v1281_v50 = vcombine.low %v1273_v41, %v1280_v42  ;;  %v1476_v51 = vpack.c.bf16 %v984_v48, %v982_v43  ;;  %v986_v52 = vpop.f32.mrb[26].mxu1 }
 0x124   :  { %v946_v53 = vpop.f32.mrb[27].mxu0  ;;  %v987_v55 = vpop.f32.mrb[27].mxu1 }
 0x125   :  { %v1292_v54 = vrot.slane %v1475_v47, %v1601_v11  ;;  %v1373_v56 = vsel %vm1625_vm15, %v1281_v50, %v1372_v46  ;;  %v1299_v57 = vrot.slane %v1476_v51, %v1601_v11 }
 0x126   :  { %1374 = vst [vmem:[%s1681_s2 + $0x10] sm:$0xff] %v1373_v56 }
 0x127   :  { %v1314_v58 = vcombine.low %v1292_v54, %v1299_v57 }
 0x129   :  { %v1023_v59 = vpop.f32.mrb[28].mxu0  ;;  %v1064_v60 = vpop.f32.mrb[28].mxu1  ;;  %v1322_v8 = vrot.slane %v1314_v58, %v1601_v11 }
 0x12a   :  { %v1025_v61 = vpop.f32.mrb[29].mxu0  ;;  %v1066_v63 = vpop.f32.mrb[29].mxu1 }
 0x12b   :  { %v1477_v62 = vpack.c.bf16 %v1025_v61, %v1023_v59  ;;  %v1027_v1 = vpop.f32.mrb[30].mxu0  ;;  %v1478_v2 = vpack.c.bf16 %v1066_v63, %v1064_v60  ;;  %v1068_v3 = vpop.f32.mrb[30].mxu1 }
 0x12c   :  { %v1028_v4 = vpop.f32.mrb[31].mxu0  ;;  %v1069_v6 = vpop.f32.mrb[31].mxu1 }
 0x12d   :  { %v1306_v5 = vrot.slane %v1477_v62, %v1601_v11  ;;  %v1313_v7 = vrot.slane %v1478_v2, %v1601_v11 }
 0x12f   :  { %v1315_v0 = vcombine.low %v1306_v5, %v1313_v7 }
 0x131   :  { %v1329_v9 = vrot.slane %v1315_v0, %v1601_v11 }
 0x133   :  { %v1330_v10 = vcombine.low %v1322_v8, %v1329_v9 }
 0x135   :  { %v1376_v12 = vsel %vm1625_vm15, %v1330_v10, %v1375_v27 }
 0x136   :  { %1377 = vst [vmem:[%s1681_s2 + $0x18] sm:$0xff] %v1376_v12 }
 0x137   :  { %1382 = vsyncpa [#allocation3], 1 }

</bundles_post_ra>
